<compile_context>
chip_gen: v5e
topology: v5e:2x2
jax: 0.10.0
libtpu: 0.0.40
codegen_flags: <defaults>
</compile_context>

<pallas_src>
import functools

import jax
import jax.numpy as jnp
from jax import lax
from jax.experimental import pallas as pl
from jax.experimental.pallas import tpu as pltpu


def _dwsep_conv_kernel(xpad_ref, wdw_ref, wpw_ref, out_ref, *, K, tile_h, w_out):
    # xpad_ref: (1, C, Hp, Wp)   zero-padded input, one batch element
    # wdw_ref : (C, K*K)         depthwise weights, taps in lanes
    # wpw_ref : (O, C)           pointwise weights
    # out_ref : (1, O, tile_h*w_out)   lane-dense output tile
    C = wdw_ref.shape[0]
    n = tile_h * w_out

    j = pl.program_id(1)
    row0 = j * tile_h
    if tile_h % 8 == 0:
        row0 = pl.multiple_of(row0, 8)

    # Padded-input strip covering output rows [j*tile_h, (j+1)*tile_h).
    x_strip = xpad_ref[0, :, pl.ds(row0, tile_h + K - 1), :]   # (C, tile_h+K-1, Wp)

    wdw = wdw_ref[...].astype(jnp.float32)                     # (C, K*K)

    # Depthwise KxK: accumulate K*K shifted windows into a lane-dense (C, n)
    # f32 accumulator; each tap weight is a (C, 1) minor-dim broadcast.
    dw = jnp.zeros((C, n), dtype=jnp.float32)
    for t in range(K * K):
        u, v = divmod(t, K)
        win = x_strip[:, u:u + tile_h, v:v + w_out]            # (C, tile_h, w_out)
        win_flat = win.reshape(C, n).astype(jnp.float32)
        dw = dw + win_flat * wdw[:, t:t + 1]

    # Pointwise 1x1 as a single MXU matmul: (O, C) @ (C, n) -> (O, n).
    wpw = wpw_ref[...].astype(jnp.float32)
    out = jnp.dot(wpw, dw, preferred_element_type=jnp.float32)
    out_ref[0] = out.astype(out_ref.dtype)


def _pick_tile_h(h_out, w_out, C, O, budget_bytes=6 << 20):
    """Largest divisor of h_out with lane-dense (tile_h*w_out % 128 == 0)
    output blocks whose f32 intermediates fit the budget; h_out always ok."""
    divs = [t for t in range(1, h_out + 1) if h_out % t == 0]
    ok = [t for t in divs if t == h_out or (t * w_out) % 128 == 0]
    per_row = (2 * C + O) * w_out * 4
    fit = [t for t in ok if t * per_row <= budget_bytes]
    return max(fit) if fit else min(ok)


def depthwise_separable_conv(x, w_dw, w_pw, *, stride=1, kernel_size=3,
                             padding=1, tile_h=None):
    """x: (B,C,H,W); w_dw: (C,K,K) depthwise; w_pw: (O,C) pointwise. stride=1."""
    if stride != 1:
        raise NotImplementedError("stride > 1 not implemented")  # TODO(synk)
    B, C, H, W = x.shape
    O = w_pw.shape[0]
    K = kernel_size
    p = padding
    h_out = H + 2 * p - (K - 1)
    w_out = W + 2 * p - (K - 1)
    Hp, Wp = H + 2 * p, W + 2 * p

    if tile_h is None:
        tile_h = _pick_tile_h(h_out, w_out, C, O)
    assert h_out % tile_h == 0, (h_out, tile_h)
    assert tile_h == h_out or (tile_h * w_out) % 128 == 0, (tile_h, w_out)

    # Zero padding (glue) — mirrors Conv2d(padding=p).
    xpad = jnp.pad(x, ((0, 0), (0, 0), (p, p), (p, p)))

    # Compact 2-D weights: (C, K*K) taps-in-lanes and (O, C) MXU-ready.
    wdw2 = w_dw.reshape(C, K * K)
    wpw2 = w_pw.reshape(O, C)

    n = tile_h * w_out
    grid = (B, h_out // tile_h)
    kernel = functools.partial(_dwsep_conv_kernel, K=K, tile_h=tile_h, w_out=w_out)

    item = jnp.dtype(x.dtype).itemsize
    flops = 2 * B * C * h_out * w_out * K * K + 2 * B * O * C * h_out * w_out
    bytes_accessed = (xpad.size * item
                      + wdw2.size * jnp.dtype(wdw2.dtype).itemsize
                      + wpw2.size * jnp.dtype(wpw2.dtype).itemsize
                      + B * O * h_out * w_out * item)

    # Double-buffered in/out blocks + f32 intermediates, with headroom;
    # capped at 64 MiB (v7x physical VMEM).
    vmem_need = (2 * C * Hp * Wp * item
                 + 2 * O * n * item
                 + (C * (tile_h + K - 1) * Wp + 2 * C * n + O * n) * 4
                 + (1 << 20))
    vmem_limit = int(min(max(vmem_need, 32 << 20), 64 << 20))

    out_flat = pl.pallas_call(
        kernel,
        out_shape=jax.ShapeDtypeStruct((B, O, h_out * w_out), x.dtype),
        grid=grid,
        in_specs=[
            pl.BlockSpec((1, C, Hp, Wp), lambda b, j: (b, 0, 0, 0)),
            pl.BlockSpec((C, K * K), lambda b, j: (0, 0)),
            pl.BlockSpec((O, C), lambda b, j: (0, 0)),
        ],
        out_specs=pl.BlockSpec((1, O, n), lambda b, j: (b, 0, j)),
        compiler_params=pltpu.CompilerParams(
            dimension_semantics=("parallel", "parallel"),
            vmem_limit_bytes=vmem_limit),
        cost_estimate=pl.CostEstimate(
            flops=flops, transcendentals=0, bytes_accessed=bytes_accessed),
    )(xpad, wdw2, wpw2)

    return out_flat.reshape(B, O, h_out, w_out)


def _reference(x, w_dw, w_pw, *, kernel_size=3, padding=1):
    """Pure-JAX reference mirroring the PyTorch module (stride=1, no bias)."""
    B, C, H, W = x.shape
    O = w_pw.shape[0]
    dn = lax.conv_dimension_numbers(
        x.shape, (C, 1, kernel_size, kernel_size), ('NCHW', 'OIHW', 'NCHW'))
    dw = lax.conv_general_dilated(
        x, w_dw[:, None, :, :], window_strides=(1, 1),
        padding=((padding, padding), (padding, padding)),
        dimension_numbers=dn, feature_group_count=C)
    dn2 = lax.conv_dimension_numbers(
        dw.shape, (O, C, 1, 1), ('NCHW', 'OIHW', 'NCHW'))
    return lax.conv_general_dilated(
        dw, w_pw[:, :, None, None], window_strides=(1, 1), padding='VALID',
        dimension_numbers=dn2)


if __name__ == "__main__":
    key = jax.random.PRNGKey(0)
    k1, k2, k3 = jax.random.split(key, 3)
    B, C, O, H, W = 2, 4, 8, 16, 16
    x = jax.random.normal(k1, (B, C, H, W), dtype=jnp.float32)
    w_dw = jax.random.normal(k2, (C, 3, 3), dtype=jnp.float32) * 0.2
    w_pw = jax.random.normal(k3, (O, C), dtype=jnp.float32) * 0.2

    ref = _reference(x, w_dw, w_pw)

    # Exercise both the row-tiled path (grid=(B, 2), lane-dense 128-wide
    # output blocks) and the whole-image-per-batch path.
    for th in (8, None):
        out = jax.block_until_ready(
            depthwise_separable_conv(x, w_dw, w_pw, tile_h=th))
        assert out.shape == (B, O, H, W), out.shape
        err = float(jnp.max(jnp.abs(out - ref)))
        assert jnp.allclose(out, ref, atol=1e-4, rtol=1e-4), \
            f"tile_h={th}: mismatch, max err {err}"

    print("KERNEL_OK")
</pallas_src>

<mosaic_0001>
module attributes {stable_mosaic.version = 11 : i64} {
  func.func @_dwsep_conv_kernel(%arg0: i32, %arg1: i32, %arg2: memref<1x4x18x18xf32, #tpu.memory_space<vmem>>, %arg3: memref<4x9xf32, #tpu.memory_space<vmem>>, %arg4: memref<8x4xf32, #tpu.memory_space<vmem>>, %arg5: memref<1x8x128xf32, #tpu.memory_space<vmem>>) attributes {dimension_semantics = [#tpu.dimension_semantics<parallel>, #tpu.dimension_semantics<parallel>], iteration_bounds = array<i64: 2, 2>, scalar_prefetch = 0 : i64, scratch_operands = 0 : i64, tpu.core_type = #tpu.core_type<tc>, window_params = [{transform_indices = @transform_0, window_bounds = array<i64: 1, 4, 18, 18>}, {pipeline_mode = #tpu.pipeline_mode<synchronous>, transform_indices = @transform_1, window_bounds = array<i64: 4, 9>}, {pipeline_mode = #tpu.pipeline_mode<synchronous>, transform_indices = @transform_2, window_bounds = array<i64: 8, 4>}, {transform_indices = @transform_3, window_bounds = array<i64: 1, 8, 128>}]} {
    %c8_i32 = arith.constant 8 : i32
    %0 = arith.muli %arg1, %c8_i32 : i32
    %1 = tpu.assume_multiple %0, 8 : i32
    %c0 = arith.constant 0 : index
    %c0_0 = arith.constant 0 : index
    %2 = arith.index_cast %1 : i32 to index
    %c0_1 = arith.constant 0 : index
    %3 = vector.load %arg2[%c0, %c0_0, %2, %c0_1] : memref<1x4x18x18xf32, #tpu.memory_space<vmem>>, vector<1x4x10x18xf32>
    %4 = vector.shape_cast %3 : vector<1x4x10x18xf32> to vector<4x10x18xf32>
    %c0_2 = arith.constant 0 : index
    %c0_3 = arith.constant 0 : index
    %5 = vector.load %arg3[%c0_2, %c0_3] : memref<4x9xf32, #tpu.memory_space<vmem>>, vector<4x9xf32>
    %cst = arith.constant 0.000000e+00 : f32
    %6 = vector.broadcast %cst : f32 to vector<4x128xf32>
    %7 = vector.extract_strided_slice %4 {offsets = [0, 0, 0], sizes = [4, 8, 16], strides = [1, 1, 1]} : vector<4x10x18xf32> to vector<4x8x16xf32>
    %8 = vector.shape_cast %7 : vector<4x8x16xf32> to vector<4x128xf32>
    %9 = vector.extract_strided_slice %5 {offsets = [0, 0], sizes = [4, 1], strides = [1, 1]} : vector<4x9xf32> to vector<4x1xf32>
    %10 = vector.broadcast %9 : vector<4x1xf32> to vector<4x128xf32>
    %11 = arith.mulf %8, %10 : vector<4x128xf32>
    %12 = arith.addf %6, %11 : vector<4x128xf32>
    %13 = vector.extract_strided_slice %4 {offsets = [0, 0, 1], sizes = [4, 8, 16], strides = [1, 1, 1]} : vector<4x10x18xf32> to vector<4x8x16xf32>
    %14 = vector.shape_cast %13 : vector<4x8x16xf32> to vector<4x128xf32>
    %15 = vector.extract_strided_slice %5 {offsets = [0, 1], sizes = [4, 1], strides = [1, 1]} : vector<4x9xf32> to vector<4x1xf32>
    %16 = vector.broadcast %15 : vector<4x1xf32> to vector<4x128xf32>
    %17 = arith.mulf %14, %16 : vector<4x128xf32>
    %18 = arith.addf %12, %17 : vector<4x128xf32>
    %19 = vector.extract_strided_slice %4 {offsets = [0, 0, 2], sizes = [4, 8, 16], strides = [1, 1, 1]} : vector<4x10x18xf32> to vector<4x8x16xf32>
    %20 = vector.shape_cast %19 : vector<4x8x16xf32> to vector<4x128xf32>
    %21 = vector.extract_strided_slice %5 {offsets = [0, 2], sizes = [4, 1], strides = [1, 1]} : vector<4x9xf32> to vector<4x1xf32>
    %22 = vector.broadcast %21 : vector<4x1xf32> to vector<4x128xf32>
    %23 = arith.mulf %20, %22 : vector<4x128xf32>
    %24 = arith.addf %18, %23 : vector<4x128xf32>
    %25 = vector.extract_strided_slice %4 {offsets = [0, 1, 0], sizes = [4, 8, 16], strides = [1, 1, 1]} : vector<4x10x18xf32> to vector<4x8x16xf32>
    %26 = vector.shape_cast %25 : vector<4x8x16xf32> to vector<4x128xf32>
    %27 = vector.extract_strided_slice %5 {offsets = [0, 3], sizes = [4, 1], strides = [1, 1]} : vector<4x9xf32> to vector<4x1xf32>
    %28 = vector.broadcast %27 : vector<4x1xf32> to vector<4x128xf32>
    %29 = arith.mulf %26, %28 : vector<4x128xf32>
    %30 = arith.addf %24, %29 : vector<4x128xf32>
    %31 = vector.extract_strided_slice %4 {offsets = [0, 1, 1], sizes = [4, 8, 16], strides = [1, 1, 1]} : vector<4x10x18xf32> to vector<4x8x16xf32>
    %32 = vector.shape_cast %31 : vector<4x8x16xf32> to vector<4x128xf32>
    %33 = vector.extract_strided_slice %5 {offsets = [0, 4], sizes = [4, 1], strides = [1, 1]} : vector<4x9xf32> to vector<4x1xf32>
    %34 = vector.broadcast %33 : vector<4x1xf32> to vector<4x128xf32>
    %35 = arith.mulf %32, %34 : vector<4x128xf32>
    %36 = arith.addf %30, %35 : vector<4x128xf32>
    %37 = vector.extract_strided_slice %4 {offsets = [0, 1, 2], sizes = [4, 8, 16], strides = [1, 1, 1]} : vector<4x10x18xf32> to vector<4x8x16xf32>
    %38 = vector.shape_cast %37 : vector<4x8x16xf32> to vector<4x128xf32>
    %39 = vector.extract_strided_slice %5 {offsets = [0, 5], sizes = [4, 1], strides = [1, 1]} : vector<4x9xf32> to vector<4x1xf32>
    %40 = vector.broadcast %39 : vector<4x1xf32> to vector<4x128xf32>
    %41 = arith.mulf %38, %40 : vector<4x128xf32>
    %42 = arith.addf %36, %41 : vector<4x128xf32>
    %43 = vector.extract_strided_slice %4 {offsets = [0, 2, 0], sizes = [4, 8, 16], strides = [1, 1, 1]} : vector<4x10x18xf32> to vector<4x8x16xf32>
    %44 = vector.shape_cast %43 : vector<4x8x16xf32> to vector<4x128xf32>
    %45 = vector.extract_strided_slice %5 {offsets = [0, 6], sizes = [4, 1], strides = [1, 1]} : vector<4x9xf32> to vector<4x1xf32>
    %46 = vector.broadcast %45 : vector<4x1xf32> to vector<4x128xf32>
    %47 = arith.mulf %44, %46 : vector<4x128xf32>
    %48 = arith.addf %42, %47 : vector<4x128xf32>
    %49 = vector.extract_strided_slice %4 {offsets = [0, 2, 1], sizes = [4, 8, 16], strides = [1, 1, 1]} : vector<4x10x18xf32> to vector<4x8x16xf32>
    %50 = vector.shape_cast %49 : vector<4x8x16xf32> to vector<4x128xf32>
    %51 = vector.extract_strided_slice %5 {offsets = [0, 7], sizes = [4, 1], strides = [1, 1]} : vector<4x9xf32> to vector<4x1xf32>
    %52 = vector.broadcast %51 : vector<4x1xf32> to vector<4x128xf32>
    %53 = arith.mulf %50, %52 : vector<4x128xf32>
    %54 = arith.addf %48, %53 : vector<4x128xf32>
    %55 = vector.extract_strided_slice %4 {offsets = [0, 2, 2], sizes = [4, 8, 16], strides = [1, 1, 1]} : vector<4x10x18xf32> to vector<4x8x16xf32>
    %56 = vector.shape_cast %55 : vector<4x8x16xf32> to vector<4x128xf32>
    %57 = vector.extract_strided_slice %5 {offsets = [0, 8], sizes = [4, 1], strides = [1, 1]} : vector<4x9xf32> to vector<4x1xf32>
    %58 = vector.broadcast %57 : vector<4x1xf32> to vector<4x128xf32>
    %59 = arith.mulf %56, %58 : vector<4x128xf32>
    %60 = arith.addf %54, %59 : vector<4x128xf32>
    %c0_4 = arith.constant 0 : index
    %c0_5 = arith.constant 0 : index
    %61 = vector.load %arg4[%c0_4, %c0_5] : memref<8x4xf32, #tpu.memory_space<vmem>>, vector<8x4xf32>
    %cst_6 = arith.constant dense<0.000000e+00> : vector<8x128xf32>
    %62 = tpu.matmul %61, %60, %cst_6 {dimension_numbers = #tpu.dot_dimension_numbers<[1], [0], [0], [1], [0, 0, 1, 1], [], []>} : vector<8x4xf32>, vector<4x128xf32>, vector<8x128xf32> -> vector<8x128xf32>
    %c0_7 = arith.constant 0 : index
    %c0_8 = arith.constant 0 : index
    %c0_9 = arith.constant 0 : index
    %63 = vector.load %arg5[%c0_7, %c0_8, %c0_9] : memref<1x8x128xf32, #tpu.memory_space<vmem>>, vector<1x8x128xf32>
    %64 = vector.shape_cast %63 : vector<1x8x128xf32> to vector<8x128xf32>
    %65 = vector.shape_cast %62 : vector<8x128xf32> to vector<1x8x128xf32>
    tpu.vector_store %arg5[%c0_7, %c0_8, %c0_9], %65 {strides = array<i32>} : memref<1x8x128xf32, #tpu.memory_space<vmem>>, vector<1x8x128xf32>,
    return
  }
  func.func @transform_0(%arg0: i32, %arg1: i32) -> (i32, i32, i32, i32) {
    %c0_i32 = arith.constant 0 : i32
    %c0_i32_0 = arith.constant 0 : i32
    %c0_i32_1 = arith.constant 0 : i32
    %c0_i32_2 = arith.constant 0 : i32
    return %arg0, %c0_i32, %c0_i32_0, %c0_i32_1 : i32, i32, i32, i32
  }
  func.func @transform_1(%arg0: i32, %arg1: i32) -> (i32, i32) {
    %c0_i32 = arith.constant 0 : i32
    %c0_i32_0 = arith.constant 0 : i32
    %c0_i32_1 = arith.constant 0 : i32
    return %c0_i32, %c0_i32_0 : i32, i32
  }
  func.func @transform_2(%arg0: i32, %arg1: i32) -> (i32, i32) {
    %c0_i32 = arith.constant 0 : i32
    %c0_i32_0 = arith.constant 0 : i32
    %c0_i32_1 = arith.constant 0 : i32
    return %c0_i32, %c0_i32_0 : i32, i32
  }
  func.func @transform_3(%arg0: i32, %arg1: i32) -> (i32, i32, i32) {
    %c0_i32 = arith.constant 0 : i32
    %c0_i32_0 = arith.constant 0 : i32
    return %arg0, %c0_i32, %arg1 : i32, i32, i32
  }
}

</mosaic_0001>

<bundles_post_ra>
// kernel: tpu_custom_call.1
= control target key start
LH: loop header
LB: loop body
LE: loop exit
PB: predicated region body
PF: predicated region fallthrough
CT: control target
= control target key end

     0   :  { %8 = vsyncpa [#allocation3], 0  ;;  %s2274_s0 = inlined_call_operand.vmem [shape: f32[2,4,18,18], index: 0, kind: input, shape index: {}]   ;;  %s2275_s1 = inlined_call_operand.vmem [shape: f32[4,9], index: 1, kind: input, shape index: {}]   ;;  %s2276_s2 = inlined_call_operand.vmem [shape: f32[8,4], index: 2, kind: input, shape index: {}]   ;;  %s2277_s3 = inlined_call_operand.hbm [shape: f32[2,8,256], index: 3, kind: output, shape index: {}]  }
   0x1   :  { %10 = vsyncpa [#allocation3 + $0x1], 0  ;;  %s1566_s12 = smov 0   ;;  %s1568_s13 = smov 0  }
   0x2   :  { %s1570_s14 = smov 0   ;;  %s1572_s15 = smov 0  }
   0x3   :  { %s1574_s16 = smov 0   ;;  %s1576_s17 = smov 0  }
   0x4   :  { %s1578_s18 = smov 0   ;;  %s1580_s19 = smov 0  }
   0x5 LB: > { %s1312_s20 = sadd.s32 4294967295, %s1524_s19   ;;  %s1313_s21 = sadd.s32 4294967294, %s1524_s19   ;;  %s1524_s19 = sphi %s1580_s19, %s16_s19   ;;  %s1520_s18 = sphi %s1578_s18, %s2286_s18   ;;  %s1516_s17 = sphi %s1576_s17, %s2285_s17   ;;  %s1512_s16 = sphi %s1574_s16, %s2284_s16   ;;  %s1508_s15 = sphi %s1572_s15, %s2283_s15   ;;  %s1504_s14 = sphi %s1570_s14, %s2282_s14   ;;  %s1500_s13 = sphi %s1568_s13, %s2281_s13   ;;  %s1496_s12 = sphi %s1566_s12, %s2280_s12  }
   0x6   : > { %s25_s22 = sadd.s32 1, %s1516_s17  ;;  %s28_s23 = sadd.s32 1, %s1520_s18 }
   0x7   : > { %p26_p0 = scmp.ge.s32.totalorder %s25_s22, 2  ;;  %p115_p1 = scmp.ne.s32.totalorder %s1504_s14, %s1500_s13 }
   0x8   : > { %p116_p2 = scmp.eq.s32.totalorder %s1312_s20, 3  ;;  %p121_p5 = scmp.ne.s32.totalorder %s1500_s13, %s1496_s12 }
   0x9   : > { %s2288_s22 = smov (%p26_p0, %s25_s22), 0  ;;  %s2290_s23 = smov (!%p26_p0, %s28_s23), %s1520_s18 }
   0xa   : > { %s101_s24 = ssub.s32 %s1516_s17, %s2288_s22  ;;  %p1617_p3 = por %p116_p2, %p115_p1 }
   0xb   : > { %p30_p4 = scmp.ge.s32.totalorder %s2290_s23, 2  ;;  %p122_p6 = scmp.eq.s32.totalorder %s1313_s21, 3 }
   0xc   : > { %p1316_p7 = scmp.ge.s32.totalorder %s1524_s19, 1  ;;  %p154_p9 = scmp.lt.s32.totalorder %s1524_s19, 5 }
   0xd   : > { %s2292_s23 = smov (%p30_p4, %s2290_s23), 0  ;;  %p1626_p8 = por %p122_p6, %p121_p5 }
   0xe   : > { %s100_s27 = ssub.s32 %s1520_s18, %s2292_s23  ;;  %s105_s28 = sadd.s32 1, %s1504_s14 }
   0xf   : > { %s102_s29 = sor.u32 %s101_s24, %s100_s27  ;;  %p155_p10 = pnand %p1316_p7, %p154_p9 }
  0x10   : > { %p103_p11 = scmp.eq.s32.totalorder %s102_s29, 0  ;;  %p178_p12 = scmp.lt.s32.totalorder (!%p155_p10), %s1512_s16, 1 }
  0x11   : > { %158 = sbr.rel (%p155_p10) target bundleno = 596 (0x254), region = 32  ;;  %s1319_s8 = sshll.u32 (!%p155_p10), %s1508_s15, 3 }
  0x12   : > { %s1635_s30 = scalar_select %p103_p11, %s1504_s14, %s105_s28  }
  0x13   : > { %s1529_s21 = smov (!%p155_p10), 127   ;;  %s1531_s24 = smov (!%p155_p10), 64  }
  0x14   : > { %s1532_s27 = smov (!%p155_p10), 32   ;;  %s1533_s28 = smov (!%p155_p10), 96  }
  0x15   : > { %s1534_s29 = smov (!%p155_p10), 48   ;;  %s1535_s4 = smov (!%p155_p10), 16  }
  0x16   : > { %v1640_v0 = vld [vmem:[%s2275_s1] sm:$0xf]  ;;  %v1526_v1 = vmov 0   ;;  %s179_s6 = scalar_select %p178_p12, %s1512_s16, 1  ;;  %v1527_v2 = vmov 1983009808  }
  0x17   : > { %1419 = vset.pattern.permute.xlu1 %v1526_v1  ;;  %v200_v3 = vunpack.c.l.s4 %v1527_v2  ;;  %vm195_vm0 = vcmask 1047556   ;;  %v1528_v11 = vmov 1934713408   ;;  %v1530_v15 = vmov 1   ;;  %s1536_s5 = smov 80  }
  0x18   : > { %295 = vperm.xlu1 %1419, %v1640_v0   ;;  %s1327_s7 = smul.u32 96, %s179_s6  ;;  %v224_v12 = vunpack.c.l.s4 %v1528_v11  ;;  %s1537_s6 = smov 112   ;;  %vm526_vm1 = vcmask 1046528   ;;  %vm858_vm2 = vcmask 1045504   ;;  %vm279_vm3 = vcmask 130048  }
  0x19   : > { %v1660_v7 = vunpack.c.0.s8 %v200_v3  ;;  %vm281_vm4 = vcmask 261120   ;;  %vm283_vm5 = vcmask 392192   ;;  %vm285_vm6 = vcmask 523264  }
  0x1a   : > { %s182_s11 = scalar_lea.vmem %s2274_s0, %s1327_s7  ;;  %v1682_v23 = vunpack.c.0.s8 %v224_v12  ;;  %s1538_s7 = smov 126   ;;  %vm287_vm7 = vcmask 654336   ;;  %vm289_vm8 = vcmask 785408   ;;  %vm291_vm9 = vcmask 916480  }
  0x1b   : > { %s1649_s20 = scalar_lea.vmem %s182_s11, %s1319_s8  ;;  %vm1195_vm10 = vcmask 1043456   ;;  %vm1191_vm11 = vcmask 31744  }
  0x1c   : > { %v1652_v4 = vld [vmem:[%s1649_s20] sm:$0xff]  ;;  %v1655_v5 = vld [vmem:[%s1649_s20 + $0x18] sm:$0xff]  ;;  %v1658_v6 = vld [vmem:[%s1649_s20 + $0x30] sm:$0xff] }
  0x1d   : > { %v1663_v8 = vld [vmem:[%s1649_s20 + $0x48] sm:$0xff]  ;;  %v197_v9 = vrot.slane %v1652_v4, 4  ;;  %v209_v10 = vrot.slane %v1655_v5, 4  ;;  %v194_v13 = vrot.slane %v1658_v6, 4  ;;  %304 = vrot.lane.b32.xlu2 %v1652_v4, %s1529_s21  ;;  %v188_v45 = vld [vmem:[%s1649_s20 + $0x20] sm:$0x3] }
  0x1e   : > { %v207_v14 = vrot.slane %v1663_v8, 4  ;;  %v192_v46 = vld [vmem:[%s1649_s20 + $0x50] sm:$0x3]  ;;  %v530_v47 = vrot.slane %v1655_v5, 1  ;;  %v531_v48 = vrot.slane %v188_v45, 1  ;;  %v536_v49 = vrot.slane %v1663_v8, 1 }
  0x1f   : > { %v198_v16 = vsel %vm195_vm0, %v1658_v6, %v197_v9  ;;  %v210_v17 = vsel %vm195_vm0, %v1663_v8, %v209_v10  ;;  %v196_v18 = vsel %vm195_vm0, %v194_v13, %v1652_v4  ;;  %v537_v50 = vrot.slane %v192_v46, 1  ;;  %v190_v51 = vld [vmem:[%s1649_s20 + $0x38] sm:$0x3]  ;;  %v186_v58 = vld [vmem:[%s1649_s20 + $0x8] sm:$0x3]  ;;  %s1323_s20 = sshll.u32 %s1512_s16, 1 }
  0x20   : > { %1420 = vset.pattern.permute.xlu1 %v1530_v15  ;;  %v206_v19 = vperm.slane %v198_v16, %v1660_v7  ;;  %v218_v20 = vperm.slane %v210_v17, %v1660_v7  ;;  %v202_v21 = vperm.slane %v196_v18, %v1660_v7  ;;  %v208_v22 = vsel %vm195_vm0, %v207_v14, %v1655_v5 }
  0x21   : > { %v214_v24 = vperm.slane %v208_v22, %v1660_v7  ;;  %v862_v52 = vrot.slane %v1655_v5, 2  ;;  %v863_v53 = vrot.slane %v188_v45, 2  ;;  %v533_v54 = vrot.slane %v1658_v6, 1 }
  0x22   : > { %v231_v25 = vrot.slane %v218_v20, 4  ;;  %v221_v26 = vrot.slane %v202_v21, 4  ;;  %v233_v27 = vrot.slane %v206_v19, 4  ;;  %v534_v55 = vrot.slane %v190_v51, 1 }
  0x23   : > { %v219_v28 = vrot.slane %v214_v24, 4  ;;  %v532_v56 = vsel %vm526_vm1, %v530_v47, %v531_v48  ;;  %v538_v57 = vsel %vm526_vm1, %v536_v49, %v537_v50  ;;  %v864_v59 = vsel %vm858_vm2, %v862_v52, %v863_v53 }
  0x24   : > { %v232_v29 = vsel %vm195_vm0, %v231_v25, %v206_v19  ;;  %v222_v30 = vsel %vm195_vm0, %v214_v24, %v221_v26  ;;  %v234_v31 = vsel %vm195_vm0, %v218_v20, %v233_v27  ;;  %v889_v60 = vrot.slane %v864_v59, 4 }
  0x25   : > { %v238_v32 = vperm.slane %v232_v29, %v1682_v23  ;;  %v230_v33 = vperm.slane %v222_v30, %v1682_v23  ;;  %v220_v34 = vsel %vm195_vm0, %v219_v28, %v202_v21  ;;  %v242_v36 = vperm.slane %v234_v31, %v1682_v23 }
  0x26   : > { %v1692_v35 = vperm.slane %v220_v34, %v1682_v23  ;;  %v535_v61 = vsel %vm526_vm1, %v533_v54, %v534_v55  ;;  %v868_v62 = vrot.slane %v1663_v8, 2  ;;  %v869_v63 = vrot.slane %v192_v46, 2 }
  0x27   : > { %264 = vrot.lane.b32.xlu1 %v238_v32, %s1531_s24  ;;  %256 = vrot.lane.b32.xlu0 %v230_v33, %s1532_s27  ;;  %v245_v37 = vrot.slane %v230_v33, 4  ;;  %v247_v39 = vrot.slane %v238_v32, 4  ;;  %v249_v43 = vrot.slane %v242_v36, 4  ;;  %v527_v1 = vrot.slane %v1652_v4, 1 }
  0x28   : > { %v243_v38 = vrot.slane %v1692_v35, 4  ;;  %272 = vrot.lane.b32.xlu2 %v242_v36, %s1533_s28  ;;  %v528_v2 = vrot.slane %v186_v58, 1  ;;  %v870_v3 = vsel %vm858_vm2, %v868_v62, %v869_v63  ;;  %v866_v12 = vrot.slane %v190_v51, 2 }
  0x29   : > { %v246_v40 = vsel %vm195_vm0, 0.0, %v245_v37  ;;  %v248_v42 = vsel %vm195_vm0, 0.0, %v247_v39  ;;  %v250_v44 = vsel %vm195_vm0, 0.0, %v249_v43  ;;  %v1741_v9 = vsel %vm195_vm0, %v870_v3, %v889_v60 }
  0x2a   : > { %v244_v41 = vsel %vm195_vm0, 0.0, %v243_v38  ;;  %v529_v10 = vsel %vm526_vm1, %v527_v1, %v528_v2  ;;  %v859_v14 = vrot.slane %v1652_v4, 2  ;;  %v860_v15 = vrot.slane %v186_v58, 2 }
  0x2b   : > { %v555_v17 = vrot.slane %v538_v57, 4  ;;  %v557_v20 = vrot.slane %v532_v56, 4  ;;  %v545_v24 = vrot.slane %v529_v10, 4 }
  0x2c   : > { %v1763_v16 = vsel %vm858_vm2, %v859_v14, %v860_v15 }
  0x2d   : > { %v556_v19 = vsel %vm195_vm0, %v555_v17, %v532_v56  ;;  %v558_v27 = vsel %vm195_vm0, %v538_v57, %v557_v20  ;;  %v546_v29 = vsel %vm195_vm0, %v535_v61, %v545_v24 }
  0x2e   : > { %v562_v21 = vperm.slane %v556_v19, %v1660_v7  ;;  %v1782_v30 = vperm.slane %v558_v27, %v1660_v7  ;;  %v1787_v33 = vperm.slane %v546_v29, %v1660_v7 }
  0x2f   : > { %260 = vrot.lane.b32.xlu1 %v246_v40, %s1534_s29  ;;  %252 = vrot.lane.b32.xlu0 %v244_v41, %s1535_s4 }
  0x30   : > { %268 = vrot.lane.b32.xlu2 %v248_v42, %s1536_s5  ;;  %v579_v34 = vrot.slane %v1782_v30, 4  ;;  %v567_v38 = vrot.slane %v562_v21, 4 }
  0x32   : > { %v580_v36 = vsel %vm195_vm0, %v579_v34, %v1787_v33 }
  0x33   : > { %v586_v37 = vperm.slane %v580_v36, %v1682_v23 }
  0x35   : > { %v595_v45 = vrot.slane %v586_v37, 4 }
  0x37   : > { %308 = vrot.lane.b32.xlu1 %v1658_v6, %s1529_s21  ;;  %276 = vrot.lane.b32.xlu0 %v250_v44, %s1537_s6  ;;  %v596_v46 = vsel %vm195_vm0, 0.0, %v595_v45 }
  0x38   : > { %310 = vrot.lane.b32.xlu2 %v1663_v8, %s1529_s21 }
  0x3f   : > { %408 = vperm.xlu1 %1420, %v1640_v0   ;;  %306 = vrot.lane.b32.xlu0 %v1655_v5, %s1529_s21 }
  0x40   : > { %413 = vrot.lane.b32.xlu2 %v1652_v4, %s1538_s7 }
  0x47   : > { %417 = vrot.lane.b32.xlu1 %v1658_v6, %s1538_s7  ;;  %415 = vrot.lane.b32.xlu0 %v1655_v5, %s1538_s7  ;;  %v887_v5 = vrot.slane %v870_v3, 4 }
  0x48   : > { %419 = vrot.lane.b32.xlu2 %v1663_v8, %s1538_s7  ;;  %v865_v8 = vrot.slane %v1658_v6, 2  ;;  %v543_v6 = vrot.slane %v535_v61, 4 }
  0x49   : > { %v1745_v11 = vsel %vm195_vm0, %v887_v5, %v864_v59 }
  0x4a   : > { %v1755_v13 = vsel %vm858_vm2, %v865_v8, %v866_v12  ;;  %v544_v18 = vsel %vm195_vm0, %v543_v6, %v529_v10 }
  0x4b   : > { %v550_v4 = vperm.slane %v544_v18, %v1660_v7 }
  0x4d   : > { %v569_v22 = vrot.slane %v550_v4, 4  ;;  %v568_v39 = vsel %vm195_vm0, %v567_v38, %v550_v4 }
  0x4e   : > { %v1796_v40 = vperm.slane %v568_v39, %v1682_v23 }
  0x4f   : > { %642 = vrot.lane.b32.xlu1 %v532_v56, %s1529_s21  ;;  %646 = vrot.lane.b32.xlu0 %v538_v57, %s1529_s21  ;;  %v570_v25 = vsel %vm195_vm0, %v562_v21, %v569_v22 }
  0x50   : > { %644 = vrot.lane.b32.xlu2 %v535_v61, %s1529_s21  ;;  %v578_v26 = vperm.slane %v570_v25, %v1682_v23  ;;  %v591_v42 = vrot.slane %v1796_v40, 4 }
  0x52   : > { %v593_v28 = vrot.slane %v578_v26, 4  ;;  %v592_v44 = vsel %vm195_vm0, 0.0, %v591_v42 }
  0x54   : > { %v594_v31 = vsel %vm195_vm0, 0.0, %v593_v28 }
  0x57   : > { %640 = vrot.lane.b32.xlu1 %v529_v10, %s1529_s21  ;;  %755 = vrot.lane.b32.xlu0 %v538_v57, %s1538_s7 }
  0x58   : > { %751 = vrot.lane.b32.xlu2 %v532_v56, %s1538_s7 }
  0x5f   : > { %749 = vrot.lane.b32.xlu1 %v529_v10, %s1538_s7  ;;  %753 = vrot.lane.b32.xlu0 %v535_v61, %s1538_s7 }
  0x60   : > { %978 = vrot.lane.b32.xlu2 %v870_v3, %s1529_s21 }
  0x67   : > { %974 = vrot.lane.b32.xlu0 %v864_v59, %s1529_s21  ;;  %976 = vrot.lane.b32.xlu1 %v1755_v13, %s1529_s21 }
  0x68   : > { %1087 = vrot.lane.b32.xlu2 %v870_v3, %s1538_s7 }
  0x6f   : > { %972 = vrot.lane.b32.xlu0 %v1763_v16, %s1529_s21  ;;  %1083 = vrot.lane.b32.xlu1 %v864_v59, %s1538_s7  ;;  %s175_s21 = sand.u32 1, %s1500_s13  }
  0x70   : > { %1085 = vrot.lane.b32.xlu2 %v1755_v13, %s1538_s7  ;;  %s1221_s9 = scalar_lea.sflag [#allocation3], %s175_s21 }
  0x77   : > { %1081 = vrot.lane.b32.xlu0 %v1763_v16, %s1538_s7  ;;  %v305_v32 = vpop.permute.xlu2 %304  ;;  %600 = vrot.lane.b32.xlu1 %v592_v44, %s1535_s4 }
  0x78   : > { %608 = vrot.lane.b32.xlu2 %v594_v31, %s1534_s29  ;;  %v318_v1 = vrot.slane %v305_v32, 4 }
  0x7f   : > { %604 = vrot.lane.b32.xlu0 %v578_v26, %s1532_s27 }
  0x80   : > { %612 = vrot.lane.b32.xlu2 %v586_v37, %s1531_s24 }
  0x82   : > { %v273_v41 = vpop.permute.xlu2 %272 }
  0x88   : > { %616 = vrot.lane.b32.xlu2 %v596_v46, %s1536_s5 }
  0x8a   : > { %v296_v43 = vpop.permute.xlu1 %295  ;;  %v269_v47 = vpop.permute.xlu2 %268 }
  0x92   : > { %v311_v50 = vpop.permute.xlu2 %310 }
  0x93   : > { %v328_v10 = vrot.slane %v311_v50, 4 }
  0x99   : > { %v265_v48 = vpop.permute.xlu1 %264  ;;  %v257_v49 = vpop.permute.xlu0 %256 }
  0xa1   : > { %v261_v51 = vpop.permute.xlu1 %260  ;;  %v253_v52 = vpop.permute.xlu0 %252 }
  0xa2   : > { %v280_v53 = vsel %vm279_vm3, %v1692_v35, %v253_v52  ;;  %v414_v35 = vpop.permute.xlu2 %413 }
  0xa3   : > { %v282_v54 = vsel %vm281_vm4, %v280_v53, %v257_v49  ;;  %v427_v29 = vrot.slane %v414_v35, 4 }
  0xa4   : > { %v284_v55 = vsel %vm283_vm5, %v282_v54, %v261_v51  ;;  %v1539_v54 = vmov 2  }
  0xa5   : > { %v286_v56 = vsel %vm285_vm6, %v284_v55, %v265_v48  ;;  %1421 = vset.pattern.permute.xlu2 %v1539_v54  ;;  %v894_v54 = vperm.slane %v1745_v11, %v1660_v7 }
  0xa6   : > { %v288_v57 = vsel %vm287_vm7, %v286_v56, %v269_v47 }
  0xa7   : > { %v290_v58 = vsel %vm289_vm8, %v288_v57, %v273_v41 }
  0xa9   : > { %v309_v59 = vpop.permute.xlu1 %308  ;;  %v277_v60 = vpop.permute.xlu0 %276 }
  0xaa   : > { %v316_v61 = vrot.slane %v309_v59, 4  ;;  %v292_v62 = vsel %vm291_vm9, %v290_v58, %v277_v60  ;;  %v319_v3 = vsel %vm195_vm0, %v309_v59, %v318_v1  ;;  %v420_v19 = vpop.permute.xlu2 %419 }
  0xab   : > { %v1811_v63 = vmul.f32 %v296_v43, %v292_v62  ;;  %v327_v8 = vperm.slane %v319_v3, %v1660_v7  ;;  %v437_v27 = vrot.slane %v420_v19, 4 }
  0xac   : > { %v317_v2 = vsel %vm195_vm0, %v316_v61, %v305_v32 }
  0xad   : > { %v323_v5 = vperm.slane %v317_v2, %v1660_v7  ;;  %v354_v20 = vrot.slane %v327_v8, 4 }
  0xaf   : > { %v342_v17 = vrot.slane %v323_v5, 4 }
  0xb1   : > { %v1817_v12 = vpop.permute.xlu1 %408  ;;  %v307_v14 = vpop.permute.xlu0 %306 }
  0xb2   : > { %v329_v15 = vsel %vm195_vm0, %v328_v10, %v307_v14  ;;  %v330_v6 = vrot.slane %v307_v14, 4  ;;  %v1863_v2 = vpop.permute.xlu2 %644 }
  0xb3   : > { %v335_v18 = vperm.slane %v329_v15, %v1660_v7  ;;  %v652_v15 = vrot.slane %v1863_v2, 4 }
  0xb4   : > { %v331_v4 = vsel %vm195_vm0, %v311_v50, %v330_v6 }
  0xb5   : > { %v339_v21 = vperm.slane %v331_v4, %v1660_v7  ;;  %v340_v22 = vrot.slane %v335_v18, 4  ;;  %v343_v24 = vsel %vm195_vm0, %v335_v18, %v342_v17 }
  0xb6   : > { %v1825_v25 = vperm.slane %v343_v24, %v1682_v23 }
  0xb7   : > { %v352_v26 = vrot.slane %v339_v21, 4  ;;  %v355_v28 = vsel %vm195_vm0, %v339_v21, %v354_v20  ;;  %v341_v37 = vsel %vm195_vm0, %v340_v22, %v323_v5 }
  0xb8   : > { %377 = vrot.lane.b32.xlu1 %v1825_v25, %s1532_s27  ;;  %v363_v31 = vperm.slane %v355_v28, %v1682_v23  ;;  %v1841_v47 = vperm.slane %v341_v37, %v1682_v23 }
  0xb9   : > { %v418_v32 = vpop.permute.xlu1 %417  ;;  %v416_v34 = vpop.permute.xlu0 %415  ;;  %v353_v36 = vsel %vm195_vm0, %v352_v26, %v327_v8  ;;  %v366_v26 = vrot.slane %v1825_v25, 4 }
  0xba   : > { %v425_v38 = vrot.slane %v418_v32, 4  ;;  %v428_v39 = vsel %vm195_vm0, %v418_v32, %v427_v29  ;;  %v439_v41 = vrot.slane %v416_v34, 4  ;;  %393 = vrot.lane.b32.xlu2 %v363_v31, %s1533_s28  ;;  %v438_v43 = vsel %vm195_vm0, %v437_v27, %v416_v34  ;;  %v1890_v28 = vpop.permute.xlu2 %751 }
  0xbb   : > { %v436_v42 = vperm.slane %v428_v39, %v1660_v7  ;;  %v359_v44 = vperm.slane %v353_v36, %v1682_v23  ;;  %v444_v51 = vperm.slane %v438_v43, %v1660_v7  ;;  %v364_v56 = vrot.slane %v1841_v47, 4 }
  0xbc   : > { %v426_v45 = vsel %vm195_vm0, %v425_v38, %v414_v35  ;;  %v440_v46 = vsel %vm195_vm0, %v420_v19, %v439_v41  ;;  %v370_v10 = vrot.slane %v363_v31, 4  ;;  %v367_v38 = vsel %vm195_vm0, 0.0, %v366_v26 }
  0xbd   : > { %v432_v48 = vperm.slane %v426_v45, %v1660_v7  ;;  %v463_v49 = vrot.slane %v436_v42, 4  ;;  %v448_v50 = vperm.slane %v440_v46, %v1660_v7  ;;  %385 = vrot.lane.b32.xlu0 %v359_v44, %s1531_s24  ;;  %v449_v60 = vrot.slane %v444_v51, 4 }
  0xbe   : > { %v365_v35 = vsel %vm195_vm0, 0.0, %v364_v56  ;;  %v368_v1 = vrot.slane %v359_v44, 4  ;;  %v371_v19 = vsel %vm195_vm0, 0.0, %v370_v10  ;;  %v875_v43 = vrot.slane %v1755_v13, 4 }
  0xbf   : > { %v451_v52 = vrot.slane %v432_v48, 4  ;;  %v464_v53 = vsel %vm195_vm0, %v448_v50, %v463_v49  ;;  %v461_v62 = vrot.slane %v448_v50, 4  ;;  %v450_v3 = vsel %vm195_vm0, %v449_v60, %v432_v48 }
  0xc0   : > { %v1849_v55 = vperm.slane %v464_v53, %v1682_v23  ;;  %v369_v14 = vsel %vm195_vm0, 0.0, %v368_v1  ;;  %v1874_v17 = vperm.slane %v450_v3, %v1682_v23  ;;  %v1540_v3 = vmov 3  }
  0xc1   : > { %v1852_v57 = vpop.permute.xlu1 %642  ;;  %v452_v58 = vsel %vm195_vm0, %v444_v51, %v451_v52  ;;  %v1855_v59 = vpop.permute.xlu0 %646  ;;  %v462_v5 = vsel %vm195_vm0, %v461_v62, %v436_v42  ;;  %v876_v51 = vsel %vm195_vm0, %v875_v43, %v1763_v16  ;;  %1422 = vset.pattern.permute.xlu1 %v1540_v3 }
  0xc2   : > { %502 = vrot.lane.b32.xlu1 %v1849_v55, %s1533_s28  ;;  %v460_v61 = vperm.slane %v452_v58, %v1682_v23  ;;  %v664_v18 = vrot.slane %v1855_v59, 4  ;;  %v468_v4 = vperm.slane %v462_v5, %v1682_v23  ;;  %v473_v21 = vrot.slane %v1874_v17, 4  ;;  %v1912_v50 = vpop.permute.xlu2 %978 }
  0xc3   : > { %v666_v1 = vrot.slane %v1852_v57, 4  ;;  %v899_v5 = vrot.slane %v894_v54, 4 }
  0xc4   : > { %486 = vrot.lane.b32.xlu2 %v460_v61, %s1532_s27  ;;  %v665_v22 = vsel %vm195_vm0, %v664_v18, %v1852_v57  ;;  %v475_v29 = vrot.slane %v460_v61, 4  ;;  %v474_v32 = vsel %vm195_vm0, 0.0, %v473_v21  ;;  %v477_v45 = vrot.slane %v468_v4, 4 }
  0xc5   : > { %373 = vrot.lane.b32.xlu0 %v365_v35, %s1535_s4  ;;  %v671_v31 = vperm.slane %v665_v22, %v1660_v7  ;;  %v882_v61 = vperm.slane %v876_v51, %v1660_v7  ;;  %v479_v35 = vrot.slane %v1849_v55, 4  ;;  %v667_v57 = vsel %vm195_vm0, %v1855_v59, %v666_v1 }
  0xc6   : > { %v476_v41 = vsel %vm195_vm0, 0.0, %v475_v29  ;;  %v478_v52 = vsel %vm195_vm0, 0.0, %v477_v45  ;;  %v877_v22 = vrot.slane %v1763_v16, 4  ;;  %v1956_v59 = vperm.slane %v1741_v9, %v1660_v7 }
  0xc7   : > { %v676_v44 = vrot.slane %v671_v31, 4  ;;  %v1935_v18 = vsel %vm195_vm0, %v899_v5, %v882_v61  ;;  %v675_v26 = vperm.slane %v667_v57, %v1660_v7 }
  0xc8   : > { %v878_v9 = vsel %vm195_vm0, %v1755_v13, %v877_v22  ;;  %v2023_v22 = vperm.slane %v1935_v18, %v1682_v23 }
  0xc9   : > { %v1867_v8 = vpop.permute.xlu1 %640  ;;  %v1871_v6 = vpop.permute.xlu0 %755 }
  0xca   : > { %389 = vrot.lane.b32.xlu1 %v369_v14, %s1536_s5  ;;  %v653_v20 = vsel %vm195_vm0, %v652_v15, %v1867_v8  ;;  %v773_v24 = vrot.slane %v1871_v6, 4  ;;  %v654_v10 = vrot.slane %v1867_v8, 4  ;;  %v1945_v8 = vpop.permute.xlu2 %1087 }
  0xcb   : > { %v659_v27 = vperm.slane %v653_v20, %v1660_v7 }
  0xcc   : > { %494 = vrot.lane.b32.xlu2 %v468_v4, %s1531_s24  ;;  %v774_v25 = vsel %vm195_vm0, %v773_v24, %v1890_v28  ;;  %v480_v4 = vsel %vm195_vm0, 0.0, %v479_v35  ;;  %v655_v21 = vsel %vm195_vm0, %v1863_v2, %v654_v10  ;;  %v996_v2 = vrot.slane %v1912_v50, 4 }
  0xcd   : > { %397 = vrot.lane.b32.xlu0 %v371_v19, %s1537_s6  ;;  %v678_v39 = vrot.slane %v659_v27, 4  ;;  %v780_v46 = vperm.slane %v774_v25, %v1660_v7  ;;  %v677_v53 = vsel %vm195_vm0, %v676_v44, %v659_v27  ;;  %v663_v29 = vperm.slane %v655_v21, %v1660_v7 }
  0xce   : > { %v1925_v62 = vperm.slane %v677_v53, %v1682_v23  ;;  %v581_v44 = vrot.slane %v1787_v33, 4 }
  0xcf   : > { %v679_v49 = vsel %vm195_vm0, %v671_v31, %v678_v39  ;;  %v785_v56 = vrot.slane %v780_v46, 4  ;;  %v901_v31 = vrot.slane %v882_v61, 4  ;;  %v690_v43 = vrot.slane %v663_v29, 4 }
  0xd0   : > { %v687_v60 = vperm.slane %v679_v49, %v1682_v23  ;;  %v700_v15 = vrot.slane %v1925_v62, 4 }
  0xd1   : > { %v1894_v34 = vpop.permute.xlu0 %753  ;;  %v1898_v37 = vpop.permute.xlu1 %749  ;;  %v1966_v25 = vsel %vm195_vm0, %v894_v54, %v901_v31  ;;  %v582_v54 = vsel %vm195_vm0, %v1782_v30, %v581_v44  ;;  %v923_v31 = vrot.slane %v2023_v22, 4 }
  0xd2   : > { %482 = vrot.lane.b32.xlu1 %v474_v32, %s1535_s4  ;;  %v761_v36 = vrot.slane %v1894_v34, 4  ;;  %v701_v24 = vsel %vm195_vm0, 0.0, %v700_v15  ;;  %v702_v32 = vrot.slane %v687_v60, 4  ;;  %v1987_v51 = vpop.permute.xlu2 %1085  ;;  %v590_v61 = vperm.slane %v582_v54, %v1682_v23 }
  0xd3   : > { %v763_v15 = vrot.slane %v1898_v37, 4 }
  0xd4   : > { %381 = vrot.lane.b32.xlu2 %v367_v38, %s1534_s29  ;;  %v762_v42 = vsel %vm195_vm0, %v761_v36, %v1898_v37  ;;  %v688_v38 = vrot.slane %v675_v26, 4  ;;  %v703_v49 = vsel %vm195_vm0, 0.0, %v702_v32  ;;  %v597_v5 = vrot.slane %v590_v61, 4 }
  0xd5   : > { %490 = vrot.lane.b32.xlu0 %v476_v41, %s1534_s29  ;;  %v768_v48 = vperm.slane %v762_v42, %v1660_v7  ;;  %v1972_v41 = vperm.slane %v878_v9, %v1660_v7  ;;  %v911_v42 = vrot.slane %v1956_v59, 4  ;;  %v1541_v37 = vmov 4  }
  0xd6   : > { %v689_v33 = vsel %vm195_vm0, %v688_v38, %v663_v29  ;;  %v598_v21 = vsel %vm195_vm0, 0.0, %v597_v5  ;;  %1423 = vset.pattern.permute.xlu0 %v1541_v37  ;;  %v1542_v37 = vmov 6  }
  0xd7   : > { %v787_v58 = vrot.slane %v768_v48, 4  ;;  %v786_v11 = vsel %vm195_vm0, %v785_v56, %v768_v48  ;;  %v1983_v48 = vsel %vm195_vm0, %v911_v42, %v1972_v41  ;;  %v691_v56 = vsel %vm195_vm0, %v675_v26, %v690_v43 }
  0xd8   : > { %v1939_v55 = vperm.slane %v786_v11, %v1682_v23  ;;  %v699_v1 = vperm.slane %v691_v56, %v1682_v23  ;;  %v913_v54 = vrot.slane %v1972_v41, 4 }
  0xd9   : > { %v788_v14 = vsel %vm195_vm0, %v780_v46, %v787_v58  ;;  %v1947_v20 = vpop.permute.xlu0 %974  ;;  %v1963_v36 = vpop.permute.xlu1 %976 }
  0xda   : > { %498 = vrot.lane.b32.xlu1 %v478_v52, %s1536_s5  ;;  %v796_v19 = vperm.slane %v788_v14, %v1682_v23  ;;  %v809_v27 = vrot.slane %v1939_v55, 4  ;;  %v997_v46 = vsel %vm195_vm0, %v996_v2, %v1947_v20  ;;  %v984_v13 = vrot.slane %v1963_v36, 4  ;;  %v609_v3 = vpop.permute.xlu2 %608 }
  0xdb   : > { %v1994_v53 = vperm.slane %v997_v46, %v1660_v7  ;;  %v706_v14 = vrot.slane %v699_v1, 4  ;;  %v1105_v2 = vrot.slane %v1945_v8, 4 }
  0xdc   : > { %517 = vperm.xlu2 %1421, %v1640_v0   ;;  %v811_v16 = vrot.slane %v796_v19, 4  ;;  %v810_v39 = vsel %vm195_vm0, 0.0, %v809_v27  ;;  %v764_v27 = vsel %vm195_vm0, %v1894_v34, %v763_v15  ;;  %v924_v34 = vsel %vm195_vm0, 0.0, %v923_v31 }
  0xdd   : > { %713 = vrot.lane.b32.xlu0 %v687_v60, %s1532_s27  ;;  %v695_v60 = vperm.slane %v689_v33, %v1682_v23  ;;  %v1008_v35 = vrot.slane %v1994_v53, 4  ;;  %v707_v26 = vsel %vm195_vm0, 0.0, %v706_v14  ;;  %v772_v32 = vperm.slane %v764_v27, %v1660_v7 }
  0xde   : > { %v812_v45 = vsel %vm195_vm0, 0.0, %v811_v16 }
  0xdf   : > { %v704_v30 = vrot.slane %v695_v60, 4 }
  0xe1   : > { %v1989_v52 = vpop.permute.xlu0 %972  ;;  %v705_v57 = vsel %vm195_vm0, 0.0, %v704_v30 }
  0xe2   : > { %506 = vrot.lane.b32.xlu1 %v480_v4, %s1537_s6  ;;  %v985_v58 = vsel %vm195_vm0, %v984_v13, %v1989_v52  ;;  %v775_v4 = vrot.slane %v1890_v28, 4  ;;  %v613_v9 = vpop.permute.xlu2 %612  ;;  %v910_v13 = vperm.slane %v1966_v25, %v1682_v23  ;;  %v914_v25 = vsel %vm195_vm0, %v1956_v59, %v913_v54 }
  0xe3   : > { %v2007_v11 = vperm.slane %v985_v58, %v1660_v7 }
  0xe4   : > { %822 = vrot.lane.b32.xlu2 %v796_v19, %s1532_s27  ;;  %v776_v28 = vsel %vm195_vm0, %v1871_v6, %v775_v4  ;;  %v925_v5 = vrot.slane %v910_v13, 4  ;;  %v998_v4 = vrot.slane %v1947_v20, 4 }
  0xe5   : > { %709 = vrot.lane.b32.xlu0 %v701_v24, %s1535_s4  ;;  %v1009_v10 = vsel %vm195_vm0, %v1008_v35, %v2007_v11  ;;  %v2025_v24 = vpop.permute.xlu1 %1083  ;;  %v784_v16 = vperm.slane %v776_v28, %v1660_v7  ;;  %1425 = vset.pattern.permute.xlu2 %v1542_v37 }
  0xe6   : > { %v2017_v19 = vperm.slane %v1009_v10, %v1682_v23  ;;  %v1106_v42 = vsel %vm195_vm0, %v1105_v2, %v2025_v24  ;;  %v926_v14 = vsel %vm195_vm0, 0.0, %v925_v5  ;;  %v999_v28 = vsel %vm195_vm0, %v1912_v50, %v998_v4 }
  0xe7   : > { %v797_v44 = vrot.slane %v784_v16, 4  ;;  %v1007_v2 = vperm.slane %v999_v28, %v1660_v7  ;;  %v1107_v54 = vrot.slane %v2025_v24, 4  ;;  %v1545_v28 = vmov 8  }
  0xe8   : > { %v1032_v29 = vrot.slane %v2017_v19, 4 }
  0xe9   : > { %v2035_v18 = vpop.permute.xlu0 %1081  ;;  %v798_v58 = vsel %vm195_vm0, %v797_v44, %v772_v32 }
  0xea   : > { %818 = vrot.lane.b32.xlu1 %v810_v39, %s1535_s4  ;;  %v1033_v6 = vsel %vm195_vm0, 0.0, %v1032_v29  ;;  %v1093_v39 = vrot.slane %v1987_v51, 4  ;;  %v617_v35 = vpop.permute.xlu2 %616  ;;  %v986_v29 = vrot.slane %v1989_v52, 4 }
  0xec   : > { %826 = vrot.lane.b32.xlu2 %v812_v45, %s1534_s29  ;;  %v799_v45 = vrot.slane %v772_v32, 4  ;;  %v987_v50 = vsel %vm195_vm0, %v1963_v36, %v986_v29  ;;  %v922_v36 = vperm.slane %v914_v25, %v1682_v23  ;;  %v1095_v25 = vrot.slane %v2035_v18, 4 }
  0xed   : > { %717 = vrot.lane.b32.xlu0 %v703_v49, %s1534_s29  ;;  %v601_v38 = vpop.permute.xlu1 %600  ;;  %v2054_v49 = vperm.slane %v1106_v42, %v1660_v7 }
  0xee   : > { %v627_v43 = vsel %vm279_vm3, %v1796_v40, %v601_v38  ;;  %v1094_v40 = vsel %vm195_vm0, %v1093_v39, %v2035_v18  ;;  %v929_v44 = vrot.slane %v922_v36, 4 }
  0xef   : > { %v1117_v41 = vrot.slane %v2054_v49, 4 }
  0xf1   : > { %v605_v46 = vpop.permute.xlu0 %604 }
  0xf2   : > { %721 = vrot.lane.b32.xlu1 %v695_v60, %s1531_s24  ;;  %v628_v33 = vsel %vm281_vm4, %v627_v43, %v605_v46  ;;  %v918_v60 = vperm.slane %v1983_v48, %v1682_v23  ;;  %v1543_v46 = vmov 5  }
  0xf3   : > { %v629_v56 = vsel %vm283_vm5, %v628_v33, %v609_v3  ;;  %v804_v3 = vperm.slane %v798_v58, %v1682_v23  ;;  %v930_v33 = vsel %vm195_vm0, 0.0, %v929_v44  ;;  %v1108_v58 = vsel %vm195_vm0, %v1945_v8, %v1107_v54 }
  0xf4   : > { %729 = vrot.lane.b32.xlu2 %v699_v1, %s1533_s28  ;;  %v2070_v1 = vperm.slane %v1094_v40, %v1660_v7  ;;  %v630_v30 = vsel %vm285_vm6, %v629_v56, %v613_v9  ;;  %v1020_v9 = vrot.slane %v1007_v2, 4  ;;  %v1116_v24 = vperm.slane %v1108_v58, %v1660_v7 }
  0xf5   : > { %620 = vrot.lane.b32.xlu0 %v590_v61, %s1533_s28  ;;  %v800_v61 = vsel %vm195_vm0, %v784_v16, %v799_v45  ;;  %v2076_v10 = vsel %vm287_vm7, %v630_v30, %v617_v35  ;;  %v1010_v16 = vrot.slane %v2007_v11, 4  ;;  %v927_v11 = vrot.slane %v918_v60, 4 }
  0xf6   : > { %v808_v48 = vperm.slane %v800_v61, %v1682_v23  ;;  %v1118_v59 = vsel %vm195_vm0, %v1117_v41, %v2070_v1  ;;  %v1544_v30 = vmov 7   ;;  %v1096_v8 = vsel %vm195_vm0, %v1987_v51, %v1095_v25 }
  0xf7   : > { %v1011_v52 = vsel %vm195_vm0, %v1994_v53, %v1010_v16  ;;  %v928_v42 = vsel %vm195_vm0, 0.0, %v927_v11  ;;  %v1129_v18 = vrot.slane %v1116_v24, 4 }
  0xf8   : > { %v815_v15 = vrot.slane %v808_v48, 4  ;;  %v1019_v39 = vperm.slane %v1011_v52, %v1682_v23 }
  0xfa   : > { %725 = vrot.lane.b32.xlu1 %v705_v57, %s1536_s5  ;;  %v813_v57 = vrot.slane %v804_v3, 4  ;;  %v1034_v53 = vrot.slane %v1019_v39, 4 }
  0xfc   : > { %733 = vrot.lane.b32.xlu2 %v707_v26, %s1537_s6  ;;  %v816_v26 = vsel %vm195_vm0, 0.0, %v815_v15  ;;  %v814_v27 = vsel %vm195_vm0, 0.0, %v813_v57 }
  0xfd   : > { %624 = vrot.lane.b32.xlu0 %v598_v21, %s1537_s6  ;;  %v2085_v21 = vperm.slane %v1118_v59, %v1682_v23 }
  0xff   : > { %v1141_v20 = vrot.slane %v2085_v21, 4 }
 0x101   : > { %v1142_v32 = vsel %vm195_vm0, 0.0, %v1141_v20 }
 0x102   : > { %635 = vperm.xlu1 %1422, %v1640_v0  }
 0x104   : > { %1041 = vrot.lane.b32.xlu2 %v1033_v6, %s1535_s4  ;;  %v995_v6 = vperm.slane %v987_v50, %v1660_v7 }
 0x105   : > { %932 = vrot.lane.b32.xlu0 %v924_v34, %s1535_s4 }
 0x106   : > { %v1021_v38 = vsel %vm195_vm0, %v1020_v9, %v995_v6  ;;  %v1022_v40 = vrot.slane %v995_v6, 4 }
 0x107   : > { %v1027_v43 = vperm.slane %v1021_v38, %v1682_v23 }
 0x108   : > { %v1023_v41 = vsel %vm195_vm0, %v1007_v2, %v1022_v40 }
 0x109   : > { %v1036_v35 = vrot.slane %v1027_v43, 4  ;;  %v1031_v5 = vperm.slane %v1023_v41, %v1682_v23 }
 0x10a   : > { %936 = vrot.lane.b32.xlu1 %v910_v13, %s1532_s27  ;;  %v1035_v13 = vsel %vm195_vm0, 0.0, %v1034_v53 }
 0x10b   : > { %1426 = vset.pattern.permute.xlu1 %v1544_v30  ;;  %v1037_v59 = vsel %vm195_vm0, 0.0, %v1036_v35  ;;  %v1038_v4 = vrot.slane %v1031_v5, 4 }
 0x10c   : > { %944 = vrot.lane.b32.xlu2 %v918_v60, %s1531_s24 }
 0x10d   : > { %830 = vrot.lane.b32.xlu0 %v804_v3, %s1531_s24  ;;  %v1119_v3 = vrot.slane %v2070_v1, 4  ;;  %v1104_v1 = vperm.slane %v1096_v8, %v1660_v7  ;;  %v1039_v20 = vsel %vm195_vm0, 0.0, %v1038_v4 }
 0x112   : > { %940 = vrot.lane.b32.xlu1 %v926_v14, %s1534_s29  ;;  %v1120_v14 = vsel %vm195_vm0, %v2054_v49, %v1119_v3 }
 0x113   : > { %v1128_v51 = vperm.slane %v1120_v14, %v1682_v23 }
 0x114   : > { %842 = vrot.lane.b32.xlu2 %v816_v26, %s1537_s6  ;;  %v2096_v31 = vpop.permute.xlu2 %393 }
 0x115   : > { %834 = vrot.lane.b32.xlu0 %v814_v27, %s1536_s5  ;;  %v1131_v27 = vrot.slane %v1104_v1, 4  ;;  %v1143_v16 = vrot.slane %v1128_v51, 4 }
 0x117   : > { %v1132_v9 = vsel %vm195_vm0, %v1116_v24, %v1131_v27  ;;  %v1144_v38 = vsel %vm195_vm0, 0.0, %v1143_v16 }
 0x11a   : > { %838 = vrot.lane.b32.xlu1 %v808_v48, %s1533_s28 }
 0x11c   : > { %1150 = vrot.lane.b32.xlu2 %v1142_v32, %s1535_s4 }
 0x11d   : > { %744 = vperm.xlu0 %1423, %v1640_v0  }
 0x11e   : > { %v2109_v34 = vpop.permute.xlu2 %486 }
 0x122   : > { %1045 = vrot.lane.b32.xlu1 %v1019_v39, %s1532_s27 }
 0x124   : > { %1053 = vrot.lane.b32.xlu2 %v1027_v43, %s1531_s24 }
 0x125   : > { %948 = vrot.lane.b32.xlu0 %v928_v42, %s1536_s5 }
 0x126   : > { %v2119_v45 = vpop.permute.xlu2 %494  ;;  %1424 = vset.pattern.permute.xlu0 %v1543_v46 }
 0x12a   : > { %1049 = vrot.lane.b32.xlu1 %v1035_v13, %s1534_s29  ;;  %v378_v56 = vpop.permute.xlu1 %377 }
 0x12c   : > { %956 = vrot.lane.b32.xlu2 %v930_v33, %s1537_s6 }
 0x12d   : > { %853 = vperm.xlu0 %1424, %v1640_v0  }
 0x12e   : > { %v382_v60 = vpop.permute.xlu2 %381 }
 0x12f   : > { %v386_v61 = vpop.permute.xlu0 %385 }
 0x132   : > { %952 = vrot.lane.b32.xlu1 %v922_v36, %s1533_s28  ;;  %v1140_v36 = vperm.slane %v1132_v9, %v1682_v23 }
 0x134   : > { %v503_v48 = vpop.permute.xlu1 %502  ;;  %967 = vperm.xlu2 %1425, %v1640_v0   ;;  %v1130_v0 = vsel %vm195_vm0, %v1129_v18, %v1104_v1  ;;  %v1147_v13 = vrot.slane %v1140_v36, 4 }
 0x135   : > { %1057 = vrot.lane.b32.xlu0 %v1037_v59, %s1536_s5 }
 0x136   : > { %v518_v57 = vpop.permute.xlu2 %517  ;;  %1428 = vset.pattern.permute.xlu0 %v1545_v28  ;;  %v1148_v54 = vsel %vm195_vm0, 0.0, %v1147_v13 }
 0x137   : > { %v374_v15 = vpop.permute.xlu0 %373 }
 0x138   : > { %v400_v26 = vsel %vm279_vm3, %v1841_v47, %v374_v15  ;;  %v1136_v47 = vperm.slane %v1130_v0, %v1682_v23 }
 0x139   : > { %v401_v37 = vsel %vm281_vm4, %v400_v26, %v378_v56  ;;  %v1429_v56 = vld [vmem:[%s2275_s1] sm:$0xf] }
 0x13a   : > { %1154 = vrot.lane.b32.xlu1 %v1128_v51, %s1532_s27  ;;  %v402_v49 = vsel %vm283_vm5, %v401_v37, %v382_v60  ;;  %v1145_v52 = vrot.slane %v1136_v47, 4  ;;  %s1317_s27 = sshll.u32 %s175_s21, 3 }
 0x13b   : > { %v403_v7 = vsel %vm285_vm6, %v402_v49, %v386_v61 }
 0x13c   : > { %v390_v29 = vpop.permute.xlu1 %389  ;;  %1065 = vrot.lane.b32.xlu2 %v1039_v20, %s1537_s6 }
 0x13d   : > { %v404_v2 = vsel %vm287_vm7, %v403_v7, %v390_v29  ;;  %1061 = vrot.lane.b32.xlu0 %v1031_v5, %s1533_s28 }
 0x13e   : > { %v405_v32 = vsel %vm289_vm8, %v404_v2, %v2096_v31  ;;  %v823_v39 = vpop.permute.xlu2 %822  ;;  %v1146_v31 = vsel %vm195_vm0, 0.0, %v1145_v52 }
 0x13f   : > { %v398_v50 = vpop.permute.xlu0 %397 }
 0x140   : > { %v406_v6 = vsel %vm291_vm9, %v405_v32, %v398_v50 }
 0x141   : > { %v411_v11 = vmul.f32 %v1817_v12, %v406_v6 }
 0x142   : > { %1158 = vrot.lane.b32.xlu1 %v1144_v38, %s1534_s29 }
 0x143   : > { %v412_v42 = vadd.f32 %v411_v11, %v1811_v63 }
 0x144   : > { %v483_v43 = vpop.permute.xlu1 %482  ;;  %1170 = vrot.lane.b32.xlu2 %v1140_v36, %s1533_s28 }
 0x145   : > { %v509_v53 = vsel %vm279_vm3, %v1874_v17, %v483_v43  ;;  %1166 = vrot.lane.b32.xlu0 %v1146_v31, %s1536_s5 }
 0x146   : > { %v510_v12 = vsel %vm281_vm4, %v509_v53, %v2109_v34  ;;  %v827_v63 = vpop.permute.xlu2 %826 }
 0x147   : > { %v491_v44 = vpop.permute.xlu0 %490 }
 0x148   : > { %v511_v46 = vsel %vm283_vm5, %v510_v12, %v491_v44 }
 0x149   : > { %v512_v23 = vsel %vm285_vm6, %v511_v46, %v2119_v45 }
 0x14a   : > { %1162 = vrot.lane.b32.xlu1 %v1136_v47, %s1531_s24  ;;  %s1231_s24 = sadd.s32 %s1508_s15, %s1323_s20  ;;  %s1450_s20 = scalar_lea.hbm %s2277_s3, 32 }
 0x14b   : > { %s1324_s28 = sshll.u32 %s1231_s24, 3 }
 0x14c   : > { %v499_v33 = vpop.permute.xlu1 %498  ;;  %s1233_s5 = scalar_lea.hbm %s2277_s3, %s1324_s28 }
 0x14d   : > { %v513_v17 = vsel %vm287_vm7, %v512_v23, %v499_v33  ;;  %1174 = vrot.lane.b32.xlu0 %v1148_v54, %s1537_s6  ;;  %s177_s6 = scalar_lea.vmem [#allocation2], %s1317_s27  ;;  %s1237_s8 = sshll.u32 %s1233_s5, 4  ;;  %s1238_s8 = int_to_ptr.hbm [resolvable:$true] %s1237_s8 }
 0x14e   : > { %v514_v40 = vsel %vm289_vm8, %v513_v17, %v503_v48  ;;  %v730_v60 = vpop.permute.xlu2 %729  ;;  %s1235_s7 = sshll.u32 %s177_s6, 4  ;;  %s1444_s10 = sshra.s32 %s1238_s8, 4  ;;  %s1236_s7 = int_to_ptr.vmem [resolvable:$true] %s1235_s7  ;;  %s1445_s10 = int_to_ptr.hbm [resolvable:$true] %s1444_s10 }
 0x14f   : > { %v714_v34 = vpop.permute.xlu0 %713  ;;  %s1446_s16 = scalar_lea.hbm %s1445_s10, 8  ;;  %p1451_p2 = scmp.lt.s32.totalorder %s1445_s10, %s2277_s3 }
 0x150   : > { %p1447_p13 = scmp.ne.s32.totalorder %s1445_s10, %s1446_s16  ;;  %p1452_p4 = scmp.lt.s32.totalorder %s1450_s20, %s1446_s16 }
 0x152   : > { %1076 = vperm.xlu1 %1426, %v1429_v56   ;;  %p1448_p0 = pnand %p1447_p13, %p1617_p3  ;;  %p1453_p5 = por %p1452_p4, %p1451_p2 }
 0x154   : > { %v507_v58 = vpop.permute.xlu1 %506  ;;  %p1449_p1 = pneg %p1448_p0 }
 0x155   : > { %v515_v45 = vsel %vm291_vm9, %v514_v40, %v507_v58 }
 0x156   : > { %v520_v61 = vmul.f32 %v518_v57, %v515_v45  ;;  %v734_v59 = vpop.permute.xlu2 %733  ;;  %p1454_p6 = pnand %p1453_p5, %p1449_p1 }
 0x157   : > { %v710_v25 = vpop.permute.xlu0 %709 }
 0x158   : > { %v736_v35 = vsel %vm279_vm3, %v1925_v62, %v710_v25  ;;  %v521_v41 = vadd.f32 %v520_v61, %v412_v42 }
 0x159   : > { %v737_v30 = vsel %vm281_vm4, %v736_v35, %v714_v34 }
 0x15a   : > { %1427 = vset.pattern.permute.xlu1 %v1545_v28 }
 0x15b   : > { %1185 = vperm.xlu1 %1427, %v1429_v56  }
 0x15c   : > { %v819_v24 = vpop.permute.xlu1 %818 }
 0x15d   : > { %v845_v3 = vsel %vm279_vm3, %v1939_v55, %v819_v24 }
 0x15e   : > { %v846_v5 = vsel %vm281_vm4, %v845_v3, %v823_v39  ;;  %v1042_v4 = vpop.permute.xlu2 %1041 }
 0x15f   : > { %v718_v8 = vpop.permute.xlu0 %717  ;;  %v847_v48 = vsel %vm283_vm5, %v846_v5, %v827_v63 }
 0x160   : > { %v738_v18 = vsel %vm283_vm5, %v737_v30, %v718_v8  ;;  %v1068_v30 = vsel %vm279_vm3, %v2017_v19, %v1042_v4 }
 0x164   : > { %v722_v14 = vpop.permute.xlu1 %721 }
 0x165   : > { %v739_v62 = vsel %vm285_vm6, %v738_v18, %v722_v14 }
 0x166   : > { %v945_v28 = vpop.permute.xlu2 %944 }
 0x167   : > { %v621_v1 = vpop.permute.xlu0 %620 }
 0x168   : > { %v632_v15 = vsel %vm289_vm8, %v2076_v10, %v621_v1 }
 0x16c   : > { %v726_v57 = vpop.permute.xlu1 %725 }
 0x16d   : > { %v740_v26 = vsel %vm287_vm7, %v739_v62, %v726_v57 }
 0x16e   : > { %v741_v55 = vsel %vm289_vm8, %v740_v26, %v730_v60  ;;  %v843_v47 = vpop.permute.xlu2 %842 }
 0x16f   : > { %v625_v51 = vpop.permute.xlu0 %624  ;;  %v742_v37 = vsel %vm291_vm9, %v741_v55, %v734_v59 }
 0x170   : > { %v633_v0 = vsel %vm291_vm9, %v632_v15, %v625_v51 }
 0x174   : > { %v636_v49 = vpop.permute.xlu1 %635 }
 0x175   : > { %v638_v27 = vmul.f32 %v636_v49, %v633_v0 }
 0x176   : > { %v1151_v32 = vpop.permute.xlu2 %1150 }
 0x177   : > { %v639_v7 = vadd.f32 %v638_v27, %v521_v41  ;;  %v933_v20 = vpop.permute.xlu0 %932  ;;  %v1177_v8 = vsel %vm279_vm3, %v2085_v21, %v1151_v32 }
 0x178   : > { %v959_v43 = vsel %vm279_vm3, %v2023_v22, %v933_v20 }
 0x17c   : > { %v937_v29 = vpop.permute.xlu1 %936 }
 0x17d   : > { %v960_v44 = vsel %vm281_vm4, %v959_v43, %v937_v29 }
 0x17e   : > { %v1054_v52 = vpop.permute.xlu2 %1053 }
 0x17f   : > { %v831_v2 = vpop.permute.xlu0 %830 }
 0x180   : > { %v848_v36 = vsel %vm285_vm6, %v847_v48, %v831_v2 }
 0x184   : > { %v941_v10 = vpop.permute.xlu1 %940 }
 0x185   : > { %v961_v23 = vsel %vm283_vm5, %v960_v44, %v941_v10 }
 0x186   : > { %v957_v31 = vpop.permute.xlu2 %956  ;;  %v962_v54 = vsel %vm285_vm6, %v961_v23, %v945_v28 }
 0x187   : > { %v835_v16 = vpop.permute.xlu0 %834 }
 0x188   : > { %v849_v42 = vsel %vm287_vm7, %v848_v36, %v835_v16 }
 0x18c   : > { %v839_v50 = vpop.permute.xlu1 %838 }
 0x18d   : > { %v850_v53 = vsel %vm289_vm8, %v849_v42, %v839_v50 }
 0x18e   : > { %v851_v46 = vsel %vm291_vm9, %v850_v53, %v843_v47  ;;  %v968_v34 = vpop.permute.xlu2 %967 }
 0x18f   : > { %v745_v9 = vpop.permute.xlu0 %744 }
 0x190   : > { %v747_v6 = vmul.f32 %v745_v9, %v742_v37 }
 0x192   : > { %v748_v11 = vadd.f32 %v747_v6, %v639_v7  ;;  %v1190_v7 = vld [vmem:[%s2276_s2] sm:$0xff] }
 0x194   : > { %v1046_v38 = vpop.permute.xlu1 %1045 }
 0x195   : > { %v1069_v3 = vsel %vm281_vm4, %v1068_v30, %v1046_v38 }
 0x196   : > { %v1066_v24 = vpop.permute.xlu2 %1065 }
 0x197   : > { %v949_v39 = vpop.permute.xlu0 %948 }
 0x198   : > { %v963_v17 = vsel %vm287_vm7, %v962_v54, %v949_v39 }
 0x19c   : > { %v1050_v12 = vpop.permute.xlu1 %1049 }
 0x19d   : > { %v1070_v48 = vsel %vm283_vm5, %v1069_v3, %v1050_v12 }
 0x19e   : > { %v1071_v14 = vsel %vm285_vm6, %v1070_v48, %v1054_v52  ;;  %v1171_v57 = vpop.permute.xlu2 %1170 }
 0x19f   : > { %v854_v13 = vpop.permute.xlu0 %853 }
 0x1a0   : > { %v856_v63 = vmul.f32 %v854_v13, %v851_v46 }
 0x1a2   : > { %v857_v33 = vadd.f32 %v856_v63, %v748_v11 }
 0x1a4   : > { %v953_v40 = vpop.permute.xlu1 %952 }
 0x1a5   : > { %v964_v22 = vsel %vm289_vm8, %v963_v17, %v953_v40 }
 0x1a6   : > { %v965_v56 = vsel %vm291_vm9, %v964_v22, %v957_v31 }
 0x1a7   : > { %v970_v58 = vmul.f32 %v968_v34, %v965_v56  ;;  %v1058_v60 = vpop.permute.xlu0 %1057 }
 0x1a8   : > { %v1072_v19 = vsel %vm287_vm7, %v1071_v14, %v1058_v60 }
 0x1a9   : > { %v971_v45 = vadd.f32 %v970_v58, %v857_v33 }
 0x1ac   : > { %v1155_v61 = vpop.permute.xlu1 %1154 }
 0x1ad   : > { %v1178_v59 = vsel %vm281_vm4, %v1177_v8, %v1155_v61 }
 0x1af   : > { %v1062_v35 = vpop.permute.xlu0 %1061 }
 0x1b0   : > { %v1073_v15 = vsel %vm289_vm8, %v1072_v19, %v1062_v35 }
 0x1b1   : > { %v1074_v21 = vsel %vm291_vm9, %v1073_v15, %v1066_v24 }
 0x1b4   : > { %v1159_v25 = vpop.permute.xlu1 %1158 }
 0x1b5   : > { %v1179_v18 = vsel %vm283_vm5, %v1178_v59, %v1159_v25 }
 0x1b7   : > { %v1167_v5 = vpop.permute.xlu0 %1166 }
 0x1bc   : > { %v1163_v41 = vpop.permute.xlu1 %1162 }
 0x1bd   : > { %v1180_v62 = vsel %vm285_vm6, %v1179_v18, %v1163_v41 }
 0x1be   : > { %v1181_v4 = vsel %vm287_vm7, %v1180_v62, %v1167_v5 }
 0x1bf   : > { %v1175_v26 = vpop.permute.xlu0 %1174  ;;  %v1182_v51 = vsel %vm289_vm8, %v1181_v4, %v1171_v57 }
 0x1c0   : > { %v1183_v0 = vsel %vm291_vm9, %v1182_v51, %v1175_v26 }
 0x1c4   : > { %v1077_v1 = vpop.permute.xlu1 %1076 }
 0x1c5   : > { %v1079_v55 = vmul.f32 %v1077_v1, %v1074_v21 }
 0x1c7   : > { %v1080_v28 = vadd.f32 %v1079_v55, %v971_v45 }
 0x1cd   : > { %v1186_v37 = vpop.permute.xlu1 %1185 }
 0x1ce   : > { %v1188_v49 = vmul.f32 %v1186_v37, %v1183_v0 }
 0x1d0   : > { %v1189_v27 = vadd.f32 %v1188_v49, %v1080_v28 }
 0x1d2   : > { %1320 = vmatpush.msk.msra.mxu0 %vm1195_vm10, %v1189_v27 }
 0x1d3   : > { %1321 = vmatmul.msk.f32.vlgmr.msra.gmra.mxu0 %vm1191_vm11, %v1190_v7 }
 0x250   : > { %v1216_v20 = vpop.f32.mrf.mxu0 }
 0x251   : > { %1219 = vst [vmem:[%s177_s6] sm:$0xff] %v1216_v20 }
 0x252   : > { %1457 = shalt.err (!%p1454_p6)
}
 0x253   : > { %1328 = dma.vmem_to_hbm [thread:$0]  (%p1617_p3), %s1236_s7, 128, %s1238_s8, %s1221_s9  }
 0x254 PF: > { %p1334_p7 = scmp.ge.s32.totalorder %s1524_s19, 2  ;;  %s1249_s21 = sand.u32 1, %s1496_s12  }
 0x255   : > { %s1250_s28 = scalar_lea.sflag [#allocation3], %s1249_s21 }
 0x256   : > { %p1331_p9 = pnand %p1334_p7, %p1626_p8 }
 0x258   : > { %p1332_p10 = pneg %p1331_p9 }
 0x25a   : > { %1491 = dma.done.wait (%p1332_p10), %s1250_s28, 128  }
 0x25b   : > { %1493 = vsyncadd (%p1332_p10), %s1250_s28, 4294967168  ;;  %s16_s19 = sadd.s32 1, %s1524_s19   ;;  %s2280_s12 = smov %s1500_s13 }
 0x25c   : > { %p13_p11 = scmp.ge.s32.totalorder %s16_s19, 6   ;;  %s2281_s13 = smov %s1504_s14 }
 0x25d   : > { %s2282_s14 = smov %s1635_s30  ;;  %s2283_s15 = smov %s1516_s17 }
 0x25e   : > { %s2284_s16 = smov %s1520_s18  ;;  %s2285_s17 = smov %s2288_s22 }
 0x25f   : > { %s2286_s18 = smov %s2292_s23  ;;  %15 = sbr.rel (!%p13_p11) target bundleno = 5 (0x5), region = 68 }
 0x264   :  { %1256 = vsyncpa [#allocation3], 1 }
 0x265   :  { %1258 = vsyncpa [#allocation3 + $0x1], 1 }

</bundles_post_ra>
